<compile_context>
chip_gen: v7x
topology: tpu7x:2x2x1
jax: 0.10.0
libtpu: 0.0.40
codegen_flags: <defaults>
</compile_context>

<pallas_src>
import functools

import jax
import jax.numpy as jnp
from jax import lax
from jax.experimental import pallas as pl
from jax.experimental.pallas import tpu as pltpu


# Tap order matches PyTorch kernel layout: t = kh*3 + kw, (dh, dw) = (kh-1, kw-1).
_TAPS = tuple((dh, dw) for dh in (-1, 0, 1) for dw in (-1, 0, 1))
_BIAS_PAD = 8   # extra K rows appended for the folded bias (first row = ones)


def _border_masks(H, W, L):
    """(1, L) lane-only validity masks realizing the 'same' zero padding."""
    lane = lax.broadcasted_iota(jnp.int32, (1, L), 1)
    col = lane % W
    not_top = lane >= W                 # valid when reading row h-1
    not_bot = lane < (H - 1) * W        # valid when reading row h+1
    not_left = col > 0                  # valid when reading col w-1
    not_right = col < (W - 1)           # valid when reading col w+1
    return not_top, not_bot, not_left, not_right


def _tap_column(x, dh, dw, masks, W, L):
    """col[:, l] = x[:, l + dh*W + dw] inside the image, 0 outside."""
    not_top, not_bot, not_left, not_right = masks
    s = dh * W + dw
    col = x if s == 0 else pltpu.roll(x, (-s) % L, 1)
    mask = None
    if dh == -1:
        mask = not_top
    elif dh == 1:
        mask = not_bot
    if dw == -1:
        mask = not_left if mask is None else mask & not_left
    elif dw == 1:
        mask = not_right if mask is None else mask & not_right
    if mask is not None:
        col = jnp.where(mask, col, jnp.zeros((), col.dtype))
    return col


def _epilogue(conv_f32, x_f32):
    """SiLU + parameter-free attention, all f32 (v5e-safe)."""
    out = conv_f32 * jax.nn.sigmoid(conv_f32)
    sim_att = jax.nn.sigmoid(out) - 0.5
    return (out + x_f32) * sim_att


def _pfa_kernel_mxu(x_ref, w_ref, o_ref, col_ref, *, H, W):
    """Fused im2col + single MXU matmul path.

    x_ref:   (BT, C, L)        input images (f32), L = H*W on the lane axis
    w_ref:   (C, 9C + 8)       stacked tap weights; column 9C holds the bias
    o_ref:   (BT, C, L)        output (x dtype)
    col_ref: (9C + 8, BT * L)  VMEM im2col scratch (row 9C = ones for bias)
    """
    BT, C, L = x_ref.shape
    K = 9 * C
    masks = _border_masks(H, W, L)

    # Ones row (bias) + zero pad rows of the im2col slab, rewritten each step.
    row_id = lax.broadcasted_iota(jnp.int32, (_BIAS_PAD, BT * L), 0)
    col_ref[K:, :] = (row_id == 0).astype(col_ref.dtype)

    for b in range(BT):
        x = x_ref[b]                                         # (C, L)
        for t, (dh, dw) in enumerate(_TAPS):
            col = _tap_column(x, dh, dw, masks, W, L)
            col_ref[t * C:(t + 1) * C, b * L:(b + 1) * L] = col.astype(col_ref.dtype)

    # One deep-K matmul for all taps + bias; pure MXU accumulation, f32 result.
    conv = jnp.dot(w_ref[...], col_ref[...], preferred_element_type=jnp.float32)

    for b in range(BT):
        res = _epilogue(conv[:, b * L:(b + 1) * L], x_ref[b].astype(jnp.float32))
        o_ref[b] = res.astype(o_ref.dtype)


def _pfa_kernel_vpu(x_ref, w_ref, o_ref, *, H, W, c_in):
    """Tiny-C path: conv as 9*c_in broadcast multiply-adds on the VPU (no MXU).

    x_ref: (BT, C, L) f32
    w_ref: (9*C*C + C, 1) f32; w[(t*C+ci)*C + co] = weight[co, ci, tap t],
           trailing C entries hold the bias.
    """
    BT, C, L = x_ref.shape
    masks = _border_masks(H, W, L)
    bias_col = w_ref[pl.ds(9 * C * C, C), :]                 # (C, 1)

    for b in range(BT):
        x = x_ref[b]                                         # (C, L)
        acc = jnp.zeros((C, L), jnp.float32)
        for t, (dh, dw) in enumerate(_TAPS):
            col = _tap_column(x, dh, dw, masks, W, L)        # (C, L)
            for ci in range(c_in):                           # padded channels are 0
                w_col = w_ref[pl.ds((t * C + ci) * C, C), :]   # (C_out, 1)
                acc = acc + w_col * col[ci:ci + 1, :]
        conv = acc + bias_col
        res = _epilogue(conv, x.astype(jnp.float32))
        o_ref[b] = res.astype(o_ref.dtype)


def parameter_free_attention(x_nchw, weight_oihw, bias, *, use_mxu=None,
                             compute_dtype=jnp.float32, block_batch=8):
    """ParameterFreeAttetion forward.

    x_nchw: (N, C, H, W) f32; weight_oihw: (C, C, 3, 3) PyTorch OIHW; bias: (C,).
    use_mxu: None -> auto (fused MXU matmul unless C <= 16).
    compute_dtype: matmul operand dtype (f32 or bf16); epilogue is always f32.
    """
    N, C, H, W = x_nchw.shape
    L = H * W
    out_dtype = x_nchw.dtype

    if use_mxu is None:
        use_mxu = C > 16
    if not use_mxu:
        compute_dtype = jnp.float32          # v5e has no bf16 VPU/EUP

    is_bf16 = jnp.dtype(compute_dtype) == jnp.dtype(jnp.bfloat16)
    cmult = 16 if is_bf16 else 8             # sublane-dense vregs / packing
    c_pad = ((C + cmult - 1) // cmult) * cmult
    if c_pad != C:
        x_nchw = jnp.pad(x_nchw, ((0, 0), (0, c_pad - C), (0, 0), (0, 0)))
        weight_oihw = jnp.pad(weight_oihw,
                              ((0, c_pad - C), (0, c_pad - C), (0, 0), (0, 0)))
        bias = jnp.pad(bias, (0, c_pad - C))
    # TODO(synk): if H*W is not a multiple of 128, pad W (and adjust the masks)
    #   so output stores stay unmasked lane-dense.

    # Metadata-only reshape; x stays f32 (exact residual, f32-safe rolls).
    x_flat = x_nchw.reshape(N, c_pad, L)

    # (O, I, kh, kw) -> (kh*3+kw, O, I); tap order matches _TAPS.
    w_taps = jnp.transpose(weight_oihw, (2, 3, 0, 1)).reshape(9, c_pad, c_pad)

    bt = max(1, min(block_batch, N))
    while N % bt:
        bt -= 1
    grid = (N // bt,)

    if use_mxu:
        # Stacked (C, 9C) weights + bias column + zero pad -> (C, 9C+8).
        w_stack = jnp.transpose(w_taps, (1, 0, 2)).reshape(c_pad, 9 * c_pad)
        tail = jnp.concatenate(
            [bias.astype(jnp.float32)[:, None],
             jnp.zeros((c_pad, _BIAS_PAD - 1), jnp.float32)], axis=1)
        w_full = jnp.concatenate([w_stack, tail], axis=1).astype(compute_dtype)
        k_total = 9 * c_pad + _BIAS_PAD
        kernel = functools.partial(_pfa_kernel_mxu, H=H, W=W)
        scratch_shapes = [pltpu.VMEM((k_total, bt * L), compute_dtype)]
        scratch_bytes = k_total * bt * L * jnp.dtype(compute_dtype).itemsize
    else:
        # Flat (9*C*C + C, 1) layout: w[(t*C+ci)*C + co] = weight[co, ci, tap t].
        w_flat = jnp.transpose(w_taps, (0, 2, 1)).reshape(-1)
        w_full = jnp.concatenate([w_flat, bias]).reshape(-1, 1).astype(jnp.float32)
        kernel = functools.partial(_pfa_kernel_vpu, H=H, W=W, c_in=C)
        scratch_shapes = []
        scratch_bytes = 0

    # Rough per-step VMEM need (double-buffered x/out + weights + scratch);
    # only raise the scoped limit when the ~32 MiB default would be exceeded.
    x_bytes = bt * c_pad * L * jnp.dtype(x_flat.dtype).itemsize
    o_bytes = bt * c_pad * L * jnp.dtype(out_dtype).itemsize
    w_bytes = int(w_full.size) * w_full.dtype.itemsize
    est = 2 * x_bytes + 2 * o_bytes + w_bytes + scratch_bytes + (1 << 20)
    cp_kwargs = dict(dimension_semantics=("parallel",))
    if est > (30 << 20):
        # TODO(synk): on v7x (64 MiB physical VMEM) prefer the halo'd spatial
        #   row tiling over just raising the limit.
        cp_kwargs["vmem_limit_bytes"] = int(min(2 * est, 100 << 20))

    out_flat = pl.pallas_call(
        kernel,
        out_shape=jax.ShapeDtypeStruct((N, c_pad, L), out_dtype),
        grid_spec=pltpu.PrefetchScalarGridSpec(
            num_scalar_prefetch=0,
            grid=grid,
            in_specs=[
                pl.BlockSpec((bt, c_pad, L), lambda i: (i, 0, 0)),
                pl.BlockSpec(w_full.shape, lambda i: (0, 0)),
            ],
            out_specs=pl.BlockSpec((bt, c_pad, L), lambda i: (i, 0, 0)),
            scratch_shapes=scratch_shapes,
        ),
        compiler_params=pltpu.CompilerParams(**cp_kwargs),
    )(x_flat, w_full)

    return out_flat[:, :C, :].reshape(N, C, H, W)


def _reference(x_nchw, weight_oihw, bias):
    """Pure-JAX reference of the PyTorch forward (NCHW / OIHW)."""
    conv = lax.conv_general_dilated(
        x_nchw, weight_oihw,
        window_strides=(1, 1), padding="SAME",
        dimension_numbers=("NCHW", "OIHW", "NCHW"))
    conv = conv + bias.reshape(1, -1, 1, 1)
    out = conv * jax.nn.sigmoid(conv)          # SiLU
    sim_att = jax.nn.sigmoid(out) - 0.5
    return (out + x_nchw) * sim_att


if __name__ == "__main__":
    key = jax.random.PRNGKey(0)
    k_x, k_w, k_b = jax.random.split(key, 3)

    N, C, H, W = 2, 4, 16, 16
    x = jax.random.normal(k_x, (N, C, H, W), dtype=jnp.float32)

    # Deterministic parameter init (Conv2d: C -> C, 3x3, bias=True), OIHW.
    fan_in = C * 3 * 3
    bound = 1.0 / (fan_in ** 0.5)
    weight = jax.random.uniform(k_w, (C, C, 3, 3), jnp.float32,
                                minval=-bound, maxval=bound)
    bias = jax.random.uniform(k_b, (C,), jnp.float32,
                              minval=-bound, maxval=bound)

    ref = _reference(x, weight, bias)

    # 1) Fused-im2col single-matmul MXU path (production path), f32 operands.
    out_mxu = jax.block_until_ready(
        parameter_free_attention(x, weight, bias, use_mxu=True))
    assert out_mxu.shape == (N, C, H, W)
    assert jnp.allclose(out_mxu, ref, atol=2e-5, rtol=2e-5), "MXU f32 mismatch"

    # 2) Tiny-C pure-VPU path (what the auto heuristic picks for C <= 16).
    out_vpu = jax.block_until_ready(
        parameter_free_attention(x, weight, bias, use_mxu=False))
    assert jnp.allclose(out_vpu, ref, atol=2e-5, rtol=2e-5), "VPU path mismatch"

    # 3) bf16 matmul operands with f32 accumulation / f32 epilogue.
    out_bf16 = jax.block_until_ready(
        parameter_free_attention(x, weight, bias, use_mxu=True,
                                 compute_dtype=jnp.bfloat16))
    assert jnp.allclose(out_bf16, ref, atol=3e-2, rtol=3e-2), "MXU bf16 mismatch"

    print("KERNEL_OK")
</pallas_src>

<mosaic_0001>
module attributes {stable_mosaic.version = 11 : i64} {
  func.func @_pfa_kernel_mxu(%arg0: i32, %arg1: memref<2x8x256xf32, #tpu.memory_space<vmem>>, %arg2: memref<8x80xf32, #tpu.memory_space<vmem>>, %arg3: memref<2x8x256xf32, #tpu.memory_space<vmem>>, %arg4: memref<80x512xf32, #tpu.memory_space<vmem>>) attributes {dimension_semantics = [#tpu.dimension_semantics<parallel>], iteration_bounds = array<i64: 1>, scalar_prefetch = 0 : i64, scratch_operands = 1 : i64, tpu.core_type = #tpu.core_type<tc>, window_params = [{transform_indices = @transform_0, window_bounds = array<i64: 2, 8, 256>}, {pipeline_mode = #tpu.pipeline_mode<synchronous>, transform_indices = @transform_1, window_bounds = array<i64: 8, 80>}, {transform_indices = @transform_2, window_bounds = array<i64: 2, 8, 256>}]} {
    %0 = tpu.iota {dimensions = array<i32: 1>} : vector<1x256xi32>
    %c16_i32 = arith.constant 16 : i32
    %c0_i32 = arith.constant 0 : i32
    %1 = arith.cmpi eq, %c16_i32, %c0_i32 : i32
    %c1_i32 = arith.constant 1 : i32
    %2 = arith.select %1, %c1_i32, %c16_i32 : i32
    %3 = vector.broadcast %2 : i32 to vector<1x256xi32>
    %4 = arith.remsi %0, %3 : vector<1x256xi32>
    %c0_i32_0 = arith.constant 0 : i32
    %5 = vector.broadcast %c0_i32_0 : i32 to vector<1x256xi32>
    %6 = arith.cmpi ne, %4, %5 : vector<1x256xi32>
    %c0_i32_1 = arith.constant 0 : i32
    %7 = vector.broadcast %c0_i32_1 : i32 to vector<1x256xi32>
    %8 = arith.cmpi slt, %4, %7 : vector<1x256xi32>
    %c0_i32_2 = arith.constant 0 : i32
    %9 = arith.cmpi slt, %2, %c0_i32_2 : i32
    %10 = vector.broadcast %9 : i1 to vector<1x256xi1>
    %11 = vector.broadcast %10 : vector<1x256xi1> to vector<1x256xi1>
    %12 = arith.xori %8, %11 : vector<1x256xi1>
    %13 = arith.andi %12, %6 : vector<1x256xi1>
    %14 = vector.broadcast %2 : i32 to vector<1x256xi32>
    %15 = arith.addi %4, %14 : vector<1x256xi32>
    %16 = arith.select %13, %15, %4 : vector<1x256xi1>, vector<1x256xi32>
    %c16_i32_3 = arith.constant 16 : i32
    %17 = vector.broadcast %c16_i32_3 : i32 to vector<1x256xi32>
    %18 = arith.cmpi sge, %0, %17 : vector<1x256xi32>
    %c240_i32 = arith.constant 240 : i32
    %19 = vector.broadcast %c240_i32 : i32 to vector<1x256xi32>
    %20 = arith.cmpi slt, %0, %19 : vector<1x256xi32>
    %c0_i32_4 = arith.constant 0 : i32
    %21 = vector.broadcast %c0_i32_4 : i32 to vector<1x256xi32>
    %22 = arith.cmpi sgt, %16, %21 : vector<1x256xi32>
    %c15_i32 = arith.constant 15 : i32
    %23 = vector.broadcast %c15_i32 : i32 to vector<1x256xi32>
    %24 = arith.cmpi slt, %16, %23 : vector<1x256xi32>
    %25 = tpu.iota {dimensions = array<i32: 0>} : vector<8x512xi32>
    %c0_i32_5 = arith.constant 0 : i32
    %26 = vector.broadcast %c0_i32_5 : i32 to vector<8x512xi32>
    %27 = arith.cmpi eq, %25, %26 : vector<8x512xi32>
    %28 = arith.extui %27 : vector<8x512xi1> to vector<8x512xi32>
    %29 = arith.sitofp %28 : vector<8x512xi32> to vector<8x512xf32>
    %c72 = arith.constant 72 : index
    %c0 = arith.constant 0 : index
    %30 = vector.load %arg4[%c72, %c0] : memref<80x512xf32, #tpu.memory_space<vmem>>, vector<8x512xf32>
    tpu.vector_store %arg4[%c72, %c0], %29 {strides = array<i32>} : memref<80x512xf32, #tpu.memory_space<vmem>>, vector<8x512xf32>,
    %c0_6 = arith.constant 0 : index
    %c0_7 = arith.constant 0 : index
    %c0_8 = arith.constant 0 : index
    %31 = vector.load %arg1[%c0_6, %c0_7, %c0_8] : memref<2x8x256xf32, #tpu.memory_space<vmem>>, vector<1x8x256xf32>
    %32 = vector.shape_cast %31 : vector<1x8x256xf32> to vector<8x256xf32>
    %c17_i32 = arith.constant 17 : i32
    %33 = tpu.dynamic_rotate %32 by %c17_i32 dim 1 : vector<8x256xf32>, i32 -> vector<8x256xf32>
    %34 = arith.andi %18, %22 : vector<1x256xi1>
    %cst = arith.constant 0.000000e+00 : f32
    %35 = vector.shape_cast %34 : vector<1x256xi1> to vector<1x256xi1>
    %36 = vector.broadcast %35 : vector<1x256xi1> to vector<8x256xi1>
    %37 = vector.broadcast %cst : f32 to vector<8x256xf32>
    %38 = arith.select %36, %33, %37 : vector<8x256xi1>, vector<8x256xf32>
    %c0_9 = arith.constant 0 : index
    %c0_10 = arith.constant 0 : index
    %39 = vector.load %arg4[%c0_9, %c0_10] : memref<80x512xf32, #tpu.memory_space<vmem>>, vector<8x256xf32>
    tpu.vector_store %arg4[%c0_9, %c0_10], %38 {strides = array<i32>} : memref<80x512xf32, #tpu.memory_space<vmem>>, vector<8x256xf32>,
    %c16_i32_11 = arith.constant 16 : i32
    %40 = tpu.dynamic_rotate %32 by %c16_i32_11 dim 1 : vector<8x256xf32>, i32 -> vector<8x256xf32>
    %cst_12 = arith.constant 0.000000e+00 : f32
    %41 = vector.shape_cast %18 : vector<1x256xi1> to vector<1x256xi1>
    %42 = vector.broadcast %41 : vector<1x256xi1> to vector<8x256xi1>
    %43 = vector.broadcast %cst_12 : f32 to vector<8x256xf32>
    %44 = arith.select %42, %40, %43 : vector<8x256xi1>, vector<8x256xf32>
    %c8 = arith.constant 8 : index
    %c0_13 = arith.constant 0 : index
    %45 = vector.load %arg4[%c8, %c0_13] : memref<80x512xf32, #tpu.memory_space<vmem>>, vector<8x256xf32>
    tpu.vector_store %arg4[%c8, %c0_13], %44 {strides = array<i32>} : memref<80x512xf32, #tpu.memory_space<vmem>>, vector<8x256xf32>,
    %c15_i32_14 = arith.constant 15 : i32
    %46 = tpu.dynamic_rotate %32 by %c15_i32_14 dim 1 : vector<8x256xf32>, i32 -> vector<8x256xf32>
    %47 = arith.andi %18, %24 : vector<1x256xi1>
    %cst_15 = arith.constant 0.000000e+00 : f32
    %48 = vector.shape_cast %47 : vector<1x256xi1> to vector<1x256xi1>
    %49 = vector.broadcast %48 : vector<1x256xi1> to vector<8x256xi1>
    %50 = vector.broadcast %cst_15 : f32 to vector<8x256xf32>
    %51 = arith.select %49, %46, %50 : vector<8x256xi1>, vector<8x256xf32>
    %c16 = arith.constant 16 : index
    %c0_16 = arith.constant 0 : index
    %52 = vector.load %arg4[%c16, %c0_16] : memref<80x512xf32, #tpu.memory_space<vmem>>, vector<8x256xf32>
    tpu.vector_store %arg4[%c16, %c0_16], %51 {strides = array<i32>} : memref<80x512xf32, #tpu.memory_space<vmem>>, vector<8x256xf32>,
    %c1_i32_17 = arith.constant 1 : i32
    %53 = tpu.dynamic_rotate %32 by %c1_i32_17 dim 1 : vector<8x256xf32>, i32 -> vector<8x256xf32>
    %cst_18 = arith.constant 0.000000e+00 : f32
    %54 = vector.shape_cast %22 : vector<1x256xi1> to vector<1x256xi1>
    %55 = vector.broadcast %54 : vector<1x256xi1> to vector<8x256xi1>
    %56 = vector.broadcast %cst_18 : f32 to vector<8x256xf32>
    %57 = arith.select %55, %53, %56 : vector<8x256xi1>, vector<8x256xf32>
    %c24 = arith.constant 24 : index
    %c0_19 = arith.constant 0 : index
    %58 = vector.load %arg4[%c24, %c0_19] : memref<80x512xf32, #tpu.memory_space<vmem>>, vector<8x256xf32>
    tpu.vector_store %arg4[%c24, %c0_19], %57 {strides = array<i32>} : memref<80x512xf32, #tpu.memory_space<vmem>>, vector<8x256xf32>,
    %c32 = arith.constant 32 : index
    %c0_20 = arith.constant 0 : index
    %59 = vector.load %arg4[%c32, %c0_20] : memref<80x512xf32, #tpu.memory_space<vmem>>, vector<8x256xf32>
    tpu.vector_store %arg4[%c32, %c0_20], %32 {strides = array<i32>} : memref<80x512xf32, #tpu.memory_space<vmem>>, vector<8x256xf32>,
    %c255_i32 = arith.constant 255 : i32
    %60 = tpu.dynamic_rotate %32 by %c255_i32 dim 1 : vector<8x256xf32>, i32 -> vector<8x256xf32>
    %cst_21 = arith.constant 0.000000e+00 : f32
    %61 = vector.shape_cast %24 : vector<1x256xi1> to vector<1x256xi1>
    %62 = vector.broadcast %61 : vector<1x256xi1> to vector<8x256xi1>
    %63 = vector.broadcast %cst_21 : f32 to vector<8x256xf32>
    %64 = arith.select %62, %60, %63 : vector<8x256xi1>, vector<8x256xf32>
    %c40 = arith.constant 40 : index
    %c0_22 = arith.constant 0 : index
    %65 = vector.load %arg4[%c40, %c0_22] : memref<80x512xf32, #tpu.memory_space<vmem>>, vector<8x256xf32>
    tpu.vector_store %arg4[%c40, %c0_22], %64 {strides = array<i32>} : memref<80x512xf32, #tpu.memory_space<vmem>>, vector<8x256xf32>,
    %c241_i32 = arith.constant 241 : i32
    %66 = tpu.dynamic_rotate %32 by %c241_i32 dim 1 : vector<8x256xf32>, i32 -> vector<8x256xf32>
    %67 = arith.andi %20, %22 : vector<1x256xi1>
    %cst_23 = arith.constant 0.000000e+00 : f32
    %68 = vector.shape_cast %67 : vector<1x256xi1> to vector<1x256xi1>
    %69 = vector.broadcast %68 : vector<1x256xi1> to vector<8x256xi1>
    %70 = vector.broadcast %cst_23 : f32 to vector<8x256xf32>
    %71 = arith.select %69, %66, %70 : vector<8x256xi1>, vector<8x256xf32>
    %c48 = arith.constant 48 : index
    %c0_24 = arith.constant 0 : index
    %72 = vector.load %arg4[%c48, %c0_24] : memref<80x512xf32, #tpu.memory_space<vmem>>, vector<8x256xf32>
    tpu.vector_store %arg4[%c48, %c0_24], %71 {strides = array<i32>} : memref<80x512xf32, #tpu.memory_space<vmem>>, vector<8x256xf32>,
    %c240_i32_25 = arith.constant 240 : i32
    %73 = tpu.dynamic_rotate %32 by %c240_i32_25 dim 1 : vector<8x256xf32>, i32 -> vector<8x256xf32>
    %cst_26 = arith.constant 0.000000e+00 : f32
    %74 = vector.shape_cast %20 : vector<1x256xi1> to vector<1x256xi1>
    %75 = vector.broadcast %74 : vector<1x256xi1> to vector<8x256xi1>
    %76 = vector.broadcast %cst_26 : f32 to vector<8x256xf32>
    %77 = arith.select %75, %73, %76 : vector<8x256xi1>, vector<8x256xf32>
    %c56 = arith.constant 56 : index
    %c0_27 = arith.constant 0 : index
    %78 = vector.load %arg4[%c56, %c0_27] : memref<80x512xf32, #tpu.memory_space<vmem>>, vector<8x256xf32>
    tpu.vector_store %arg4[%c56, %c0_27], %77 {strides = array<i32>} : memref<80x512xf32, #tpu.memory_space<vmem>>, vector<8x256xf32>,
    %c239_i32 = arith.constant 239 : i32
    %79 = tpu.dynamic_rotate %32 by %c239_i32 dim 1 : vector<8x256xf32>, i32 -> vector<8x256xf32>
    %80 = arith.andi %20, %24 : vector<1x256xi1>
    %cst_28 = arith.constant 0.000000e+00 : f32
    %81 = vector.shape_cast %80 : vector<1x256xi1> to vector<1x256xi1>
    %82 = vector.broadcast %81 : vector<1x256xi1> to vector<8x256xi1>
    %83 = vector.broadcast %cst_28 : f32 to vector<8x256xf32>
    %84 = arith.select %82, %79, %83 : vector<8x256xi1>, vector<8x256xf32>
    %c64 = arith.constant 64 : index
    %c0_29 = arith.constant 0 : index
    %85 = vector.load %arg4[%c64, %c0_29] : memref<80x512xf32, #tpu.memory_space<vmem>>, vector<8x256xf32>
    tpu.vector_store %arg4[%c64, %c0_29], %84 {strides = array<i32>} : memref<80x512xf32, #tpu.memory_space<vmem>>, vector<8x256xf32>,
    %c1 = arith.constant 1 : index
    %c0_30 = arith.constant 0 : index
    %c0_31 = arith.constant 0 : index
    %86 = vector.load %arg1[%c1, %c0_30, %c0_31] : memref<2x8x256xf32, #tpu.memory_space<vmem>>, vector<1x8x256xf32>
    %87 = vector.shape_cast %86 : vector<1x8x256xf32> to vector<8x256xf32>
    %c17_i32_32 = arith.constant 17 : i32
    %88 = tpu.dynamic_rotate %87 by %c17_i32_32 dim 1 : vector<8x256xf32>, i32 -> vector<8x256xf32>
    %89 = arith.andi %18, %22 : vector<1x256xi1>
    %cst_33 = arith.constant 0.000000e+00 : f32
    %90 = vector.shape_cast %89 : vector<1x256xi1> to vector<1x256xi1>
    %91 = vector.broadcast %90 : vector<1x256xi1> to vector<8x256xi1>
    %92 = vector.broadcast %cst_33 : f32 to vector<8x256xf32>
    %93 = arith.select %91, %88, %92 : vector<8x256xi1>, vector<8x256xf32>
    %c0_34 = arith.constant 0 : index
    %c256 = arith.constant 256 : index
    %94 = vector.load %arg4[%c0_34, %c256] : memref<80x512xf32, #tpu.memory_space<vmem>>, vector<8x256xf32>
    tpu.vector_store %arg4[%c0_34, %c256], %93 {strides = array<i32>} : memref<80x512xf32, #tpu.memory_space<vmem>>, vector<8x256xf32>,
    %c16_i32_35 = arith.constant 16 : i32
    %95 = tpu.dynamic_rotate %87 by %c16_i32_35 dim 1 : vector<8x256xf32>, i32 -> vector<8x256xf32>
    %cst_36 = arith.constant 0.000000e+00 : f32
    %96 = vector.shape_cast %18 : vector<1x256xi1> to vector<1x256xi1>
    %97 = vector.broadcast %96 : vector<1x256xi1> to vector<8x256xi1>
    %98 = vector.broadcast %cst_36 : f32 to vector<8x256xf32>
    %99 = arith.select %97, %95, %98 : vector<8x256xi1>, vector<8x256xf32>
    %c8_37 = arith.constant 8 : index
    %c256_38 = arith.constant 256 : index
    %100 = vector.load %arg4[%c8_37, %c256_38] : memref<80x512xf32, #tpu.memory_space<vmem>>, vector<8x256xf32>
    tpu.vector_store %arg4[%c8_37, %c256_38], %99 {strides = array<i32>} : memref<80x512xf32, #tpu.memory_space<vmem>>, vector<8x256xf32>,
    %c15_i32_39 = arith.constant 15 : i32
    %101 = tpu.dynamic_rotate %87 by %c15_i32_39 dim 1 : vector<8x256xf32>, i32 -> vector<8x256xf32>
    %102 = arith.andi %18, %24 : vector<1x256xi1>
    %cst_40 = arith.constant 0.000000e+00 : f32
    %103 = vector.shape_cast %102 : vector<1x256xi1> to vector<1x256xi1>
    %104 = vector.broadcast %103 : vector<1x256xi1> to vector<8x256xi1>
    %105 = vector.broadcast %cst_40 : f32 to vector<8x256xf32>
    %106 = arith.select %104, %101, %105 : vector<8x256xi1>, vector<8x256xf32>
    %c16_41 = arith.constant 16 : index
    %c256_42 = arith.constant 256 : index
    %107 = vector.load %arg4[%c16_41, %c256_42] : memref<80x512xf32, #tpu.memory_space<vmem>>, vector<8x256xf32>
    tpu.vector_store %arg4[%c16_41, %c256_42], %106 {strides = array<i32>} : memref<80x512xf32, #tpu.memory_space<vmem>>, vector<8x256xf32>,
    %c1_i32_43 = arith.constant 1 : i32
    %108 = tpu.dynamic_rotate %87 by %c1_i32_43 dim 1 : vector<8x256xf32>, i32 -> vector<8x256xf32>
    %cst_44 = arith.constant 0.000000e+00 : f32
    %109 = vector.shape_cast %22 : vector<1x256xi1> to vector<1x256xi1>
    %110 = vector.broadcast %109 : vector<1x256xi1> to vector<8x256xi1>
    %111 = vector.broadcast %cst_44 : f32 to vector<8x256xf32>
    %112 = arith.select %110, %108, %111 : vector<8x256xi1>, vector<8x256xf32>
    %c24_45 = arith.constant 24 : index
    %c256_46 = arith.constant 256 : index
    %113 = vector.load %arg4[%c24_45, %c256_46] : memref<80x512xf32, #tpu.memory_space<vmem>>, vector<8x256xf32>
    tpu.vector_store %arg4[%c24_45, %c256_46], %112 {strides = array<i32>} : memref<80x512xf32, #tpu.memory_space<vmem>>, vector<8x256xf32>,
    %c32_47 = arith.constant 32 : index
    %c256_48 = arith.constant 256 : index
    %114 = vector.load %arg4[%c32_47, %c256_48] : memref<80x512xf32, #tpu.memory_space<vmem>>, vector<8x256xf32>
    tpu.vector_store %arg4[%c32_47, %c256_48], %87 {strides = array<i32>} : memref<80x512xf32, #tpu.memory_space<vmem>>, vector<8x256xf32>,
    %c255_i32_49 = arith.constant 255 : i32
    %115 = tpu.dynamic_rotate %87 by %c255_i32_49 dim 1 : vector<8x256xf32>, i32 -> vector<8x256xf32>
    %cst_50 = arith.constant 0.000000e+00 : f32
    %116 = vector.shape_cast %24 : vector<1x256xi1> to vector<1x256xi1>
    %117 = vector.broadcast %116 : vector<1x256xi1> to vector<8x256xi1>
    %118 = vector.broadcast %cst_50 : f32 to vector<8x256xf32>
    %119 = arith.select %117, %115, %118 : vector<8x256xi1>, vector<8x256xf32>
    %c40_51 = arith.constant 40 : index
    %c256_52 = arith.constant 256 : index
    %120 = vector.load %arg4[%c40_51, %c256_52] : memref<80x512xf32, #tpu.memory_space<vmem>>, vector<8x256xf32>
    tpu.vector_store %arg4[%c40_51, %c256_52], %119 {strides = array<i32>} : memref<80x512xf32, #tpu.memory_space<vmem>>, vector<8x256xf32>,
    %c241_i32_53 = arith.constant 241 : i32
    %121 = tpu.dynamic_rotate %87 by %c241_i32_53 dim 1 : vector<8x256xf32>, i32 -> vector<8x256xf32>
    %122 = arith.andi %20, %22 : vector<1x256xi1>
    %cst_54 = arith.constant 0.000000e+00 : f32
    %123 = vector.shape_cast %122 : vector<1x256xi1> to vector<1x256xi1>
    %124 = vector.broadcast %123 : vector<1x256xi1> to vector<8x256xi1>
    %125 = vector.broadcast %cst_54 : f32 to vector<8x256xf32>
    %126 = arith.select %124, %121, %125 : vector<8x256xi1>, vector<8x256xf32>
    %c48_55 = arith.constant 48 : index
    %c256_56 = arith.constant 256 : index
    %127 = vector.load %arg4[%c48_55, %c256_56] : memref<80x512xf32, #tpu.memory_space<vmem>>, vector<8x256xf32>
    tpu.vector_store %arg4[%c48_55, %c256_56], %126 {strides = array<i32>} : memref<80x512xf32, #tpu.memory_space<vmem>>, vector<8x256xf32>,
    %c240_i32_57 = arith.constant 240 : i32
    %128 = tpu.dynamic_rotate %87 by %c240_i32_57 dim 1 : vector<8x256xf32>, i32 -> vector<8x256xf32>
    %cst_58 = arith.constant 0.000000e+00 : f32
    %129 = vector.shape_cast %20 : vector<1x256xi1> to vector<1x256xi1>
    %130 = vector.broadcast %129 : vector<1x256xi1> to vector<8x256xi1>
    %131 = vector.broadcast %cst_58 : f32 to vector<8x256xf32>
    %132 = arith.select %130, %128, %131 : vector<8x256xi1>, vector<8x256xf32>
    %c56_59 = arith.constant 56 : index
    %c256_60 = arith.constant 256 : index
    %133 = vector.load %arg4[%c56_59, %c256_60] : memref<80x512xf32, #tpu.memory_space<vmem>>, vector<8x256xf32>
    tpu.vector_store %arg4[%c56_59, %c256_60], %132 {strides = array<i32>} : memref<80x512xf32, #tpu.memory_space<vmem>>, vector<8x256xf32>,
    %c239_i32_61 = arith.constant 239 : i32
    %134 = tpu.dynamic_rotate %87 by %c239_i32_61 dim 1 : vector<8x256xf32>, i32 -> vector<8x256xf32>
    %135 = arith.andi %20, %24 : vector<1x256xi1>
    %cst_62 = arith.constant 0.000000e+00 : f32
    %136 = vector.shape_cast %135 : vector<1x256xi1> to vector<1x256xi1>
    %137 = vector.broadcast %136 : vector<1x256xi1> to vector<8x256xi1>
    %138 = vector.broadcast %cst_62 : f32 to vector<8x256xf32>
    %139 = arith.select %137, %134, %138 : vector<8x256xi1>, vector<8x256xf32>
    %c64_63 = arith.constant 64 : index
    %c256_64 = arith.constant 256 : index
    %140 = vector.load %arg4[%c64_63, %c256_64] : memref<80x512xf32, #tpu.memory_space<vmem>>, vector<8x256xf32>
    tpu.vector_store %arg4[%c64_63, %c256_64], %139 {strides = array<i32>} : memref<80x512xf32, #tpu.memory_space<vmem>>, vector<8x256xf32>,
    %c0_65 = arith.constant 0 : index
    %c0_66 = arith.constant 0 : index
    %141 = vector.load %arg2[%c0_65, %c0_66] : memref<8x80xf32, #tpu.memory_space<vmem>>, vector<8x80xf32>
    %c0_67 = arith.constant 0 : index
    %c0_68 = arith.constant 0 : index
    %142 = vector.load %arg4[%c0_67, %c0_68] : memref<80x512xf32, #tpu.memory_space<vmem>>, vector<80x512xf32>
    %cst_69 = arith.constant dense<0.000000e+00> : vector<8x512xf32>
    %143 = tpu.matmul %141, %142, %cst_69 {dimension_numbers = #tpu.dot_dimension_numbers<[1], [0], [0], [1], [0, 0, 1, 1], [], []>} : vector<8x80xf32>, vector<80x512xf32>, vector<8x512xf32> -> vector<8x512xf32>
    %144 = vector.extract_strided_slice %143 {offsets = [0, 0], sizes = [8, 256], strides = [1, 1]} : vector<8x512xf32> to vector<8x256xf32>
    %c0_70 = arith.constant 0 : index
    %c0_71 = arith.constant 0 : index
    %c0_72 = arith.constant 0 : index
    %145 = vector.load %arg1[%c0_70, %c0_71, %c0_72] : memref<2x8x256xf32, #tpu.memory_space<vmem>>, vector<1x8x256xf32>
    %146 = vector.shape_cast %145 : vector<1x8x256xf32> to vector<8x256xf32>
    %147 = arith.negf %144 : vector<8x256xf32>
    %148 = math.exp %147 : vector<8x256xf32>
    %cst_73 = arith.constant 1.000000e+00 : f32
    %149 = vector.broadcast %cst_73 : f32 to vector<8x256xf32>
    %150 = arith.addf %149, %148 : vector<8x256xf32>
    %151 = arith.divf %149, %150 : vector<8x256xf32>
    %152 = arith.mulf %144, %151 : vector<8x256xf32>
    %153 = arith.negf %152 : vector<8x256xf32>
    %154 = math.exp %153 : vector<8x256xf32>
    %cst_74 = arith.constant 1.000000e+00 : f32
    %155 = vector.broadcast %cst_74 : f32 to vector<8x256xf32>
    %156 = arith.addf %155, %154 : vector<8x256xf32>
    %157 = arith.divf %155, %156 : vector<8x256xf32>
    %cst_75 = arith.constant 5.000000e-01 : f32
    %158 = vector.broadcast %cst_75 : f32 to vector<8x256xf32>
    %159 = arith.subf %157, %158 : vector<8x256xf32>
    %160 = arith.addf %152, %146 : vector<8x256xf32>
    %161 = arith.mulf %160, %159 : vector<8x256xf32>
    %c0_76 = arith.constant 0 : index
    %c0_77 = arith.constant 0 : index
    %c0_78 = arith.constant 0 : index
    %162 = vector.load %arg3[%c0_76, %c0_77, %c0_78] : memref<2x8x256xf32, #tpu.memory_space<vmem>>, vector<1x8x256xf32>
    %163 = vector.shape_cast %162 : vector<1x8x256xf32> to vector<8x256xf32>
    %164 = vector.shape_cast %161 : vector<8x256xf32> to vector<1x8x256xf32>
    tpu.vector_store %arg3[%c0_76, %c0_77, %c0_78], %164 {strides = array<i32>} : memref<2x8x256xf32, #tpu.memory_space<vmem>>, vector<1x8x256xf32>,
    %165 = vector.extract_strided_slice %143 {offsets = [0, 256], sizes = [8, 256], strides = [1, 1]} : vector<8x512xf32> to vector<8x256xf32>
    %c1_79 = arith.constant 1 : index
    %c0_80 = arith.constant 0 : index
    %c0_81 = arith.constant 0 : index
    %166 = vector.load %arg1[%c1_79, %c0_80, %c0_81] : memref<2x8x256xf32, #tpu.memory_space<vmem>>, vector<1x8x256xf32>
    %167 = vector.shape_cast %166 : vector<1x8x256xf32> to vector<8x256xf32>
    %168 = arith.negf %165 : vector<8x256xf32>
    %169 = math.exp %168 : vector<8x256xf32>
    %cst_82 = arith.constant 1.000000e+00 : f32
    %170 = vector.broadcast %cst_82 : f32 to vector<8x256xf32>
    %171 = arith.addf %170, %169 : vector<8x256xf32>
    %172 = arith.divf %170, %171 : vector<8x256xf32>
    %173 = arith.mulf %165, %172 : vector<8x256xf32>
    %174 = arith.negf %173 : vector<8x256xf32>
    %175 = math.exp %174 : vector<8x256xf32>
    %cst_83 = arith.constant 1.000000e+00 : f32
    %176 = vector.broadcast %cst_83 : f32 to vector<8x256xf32>
    %177 = arith.addf %176, %175 : vector<8x256xf32>
    %178 = arith.divf %176, %177 : vector<8x256xf32>
    %cst_84 = arith.constant 5.000000e-01 : f32
    %179 = vector.broadcast %cst_84 : f32 to vector<8x256xf32>
    %180 = arith.subf %178, %179 : vector<8x256xf32>
    %181 = arith.addf %173, %167 : vector<8x256xf32>
    %182 = arith.mulf %181, %180 : vector<8x256xf32>
    %c1_85 = arith.constant 1 : index
    %c0_86 = arith.constant 0 : index
    %c0_87 = arith.constant 0 : index
    %183 = vector.load %arg3[%c1_85, %c0_86, %c0_87] : memref<2x8x256xf32, #tpu.memory_space<vmem>>, vector<1x8x256xf32>
    %184 = vector.shape_cast %183 : vector<1x8x256xf32> to vector<8x256xf32>
    %185 = vector.shape_cast %182 : vector<8x256xf32> to vector<1x8x256xf32>
    tpu.vector_store %arg3[%c1_85, %c0_86, %c0_87], %185 {strides = array<i32>} : memref<2x8x256xf32, #tpu.memory_space<vmem>>, vector<1x8x256xf32>,
    return
  }
  func.func @transform_0(%arg0: i32) -> (i32, i32, i32) {
    %c0_i32 = arith.constant 0 : i32
    %c0_i32_0 = arith.constant 0 : i32
    %c0_i32_1 = arith.constant 0 : i32
    return %arg0, %c0_i32, %c0_i32_0 : i32, i32, i32
  }
  func.func @transform_1(%arg0: i32) -> (i32, i32) {
    %c0_i32 = arith.constant 0 : i32
    %c0_i32_0 = arith.constant 0 : i32
    %c0_i32_1 = arith.constant 0 : i32
    return %c0_i32, %c0_i32_0 : i32, i32
  }
  func.func @transform_2(%arg0: i32) -> (i32, i32, i32) {
    %c0_i32 = arith.constant 0 : i32
    %c0_i32_0 = arith.constant 0 : i32
    %c0_i32_1 = arith.constant 0 : i32
    return %arg0, %c0_i32, %c0_i32_0 : i32, i32, i32
  }
}

</mosaic_0001>

<bundles_post_ra>
// kernel: tpu_custom_call.1
= control target key start
LH: loop header
LB: loop body
LE: loop exit
PB: predicated region body
PF: predicated region fallthrough
CT: control target
= control target key end

     0   :  { %7 = vsyncpa [#allocation4], 0  ;;  %s1198_s0 = inlined_call_operand.hbm [shape: f32[2,8,256], index: 0, kind: input, shape index: {}]   ;;  %s1199_s1 = inlined_call_operand.hbm [shape: f32[8,80], index: 1, kind: input, shape index: {}]   ;;  %s1200_s2 = inlined_call_operand.hbm [shape: f32[2,8,256], index: 2, kind: output, shape index: {}]  }
   0x1   :  { %8 = vsyncpa [#allocation7], 0 }
   0x2   :  { %9 = vsyncpa [#allocation5], 0  ;;  %s883_s9 = smov [#allocation3]   ;;  %s811_s13 = scalar_lea.hbm %s1198_s0, 512 }
   0x3   :  { %s15_s10 = sshll.u32 %s883_s9, 4  ;;  %p812_p0 = scmp.ne.s32.totalorder %s1198_s0, %s811_s13  ;;  %s16_s10 = int_to_ptr.vmem [resolvable:$true] %s15_s10 }
   0x4   :  { %p815_p1 = scmp.lt.u32.totalorder %s811_s13, %s1198_s0 }
   0x6   :  { %p817_p2 = pnand %p815_p1, %p812_p0 }
   0x8   :  { %820 = shalt.err (!%p817_p2)
}
   0x9   :  { %s821_s18 = scalar_lea.vmem %s16_s10, 512  ;;  %p826_p4 = scmp.lt.s32.totalorder %s16_s10, %s16_s10 }
   0xa   :  { %p822_p3 = scmp.ne.s32.totalorder %s16_s10, %s821_s18  ;;  %p827_p5 = scmp.lt.s32.totalorder %s821_s18, %s821_s18 }
   0xc   :  { %p828_p6 = por %p827_p5, %p826_p4 }
   0xe   :  { %p829_p7 = pnand %p828_p6, %p822_p3 }
  0x10   :  { %832 = shalt.err (!%p829_p7)
}
  0x11   :  { %s884_s19 = smov 256   ;;  %s885_s20 = smov 16  }
  0x12   :  { %21 = dma.hbm_to_vmem [thread:$0]  %s1198_s0, 512, %s16_s10, [#allocation4], %s884_s19, %s884_s19, %s885_s20  }
  0x13   :  { %s886_s23 = smov [#allocation6]   ;;  %s833_s27 = scalar_lea.hbm %s1199_s1, 128 }
  0x14   :  { %s28_s24 = sshll.u32 %s886_s23, 4  ;;  %p834_p8 = scmp.ne.s32.totalorder %s1199_s1, %s833_s27  ;;  %s29_s24 = int_to_ptr.vmem [resolvable:$true] %s28_s24 }
  0x15   :  { %p837_p9 = scmp.lt.u32.totalorder %s833_s27, %s1199_s1 }
  0x17   :  { %p839_p10 = pnand %p837_p9, %p834_p8 }
  0x19   :  { %842 = shalt.err (!%p839_p10)
}
  0x1a   :  { %s843_s4 = scalar_lea.vmem %s29_s24, 128  ;;  %p848_p12 = scmp.lt.s32.totalorder %s29_s24, %s29_s24 }
  0x1b   :  { %p844_p11 = scmp.ne.s32.totalorder %s29_s24, %s843_s4  ;;  %p849_p13 = scmp.lt.s32.totalorder %s843_s4, %s843_s4 }
  0x1d   :  { %p850_p0 = por %p849_p13, %p848_p12 }
  0x1f   :  { %p851_p1 = pnand %p850_p0, %p844_p11 }
  0x21   :  { %854 = shalt.err (!%p851_p1)
}
  0x22   :  { %31 = dma.hbm_to_vmem [thread:$0]  %s1199_s1, 128, %s29_s24, [#allocation7]  }
  0x23   :  { %877 = dma.done.wait [#allocation4], 512  }
  0x24   :  { %878 = vsyncadd [#allocation4], 4294966784 }
  0x25   :  { %879 = dma.done.wait [#allocation7], 128  }
  0x26   :  { %880 = vsyncadd [#allocation7], 4294967168  ;;  %v940_v0 = vld [vmem:[#allocation3 + $0x10] sm:$0xff]  ;;  %v942_v1 = vld [vmem:[#allocation3 + $0x18] sm:$0xff]  ;;  %s887_s6 = smov 17   ;;  %s888_s1 = smov 1   ;;  %v38_v7 = vlaneseq }
  0x27   :  { %v944_v2 = vld [vmem:[#allocation3] sm:$0xff]  ;;  %v709_v3 = vpack.i.bf16 %v942_v1, %v940_v0  ;;  %v948_v4 = vld [vmem:[#allocation3 + $0x8] sm:$0xff]  ;;  %s889_s7 = smov 15   ;;  %s890_s8 = smov 127   ;;  %v893_v6 = vmov 0.0   ;;  %vm895_vm10 = vmmov 1  }
  0x28   :  { %v699_v5 = vpack.i.bf16 %v948_v4, %v944_v2  ;;  %s891_s9 = smov 112   ;;  %s892_s10 = smov 113   ;;  %408 = vmatprep.mubr.f32.mxu0 %v893_v6  ;;  %479 = vmatprep.mubr.f32.mxu1 %v893_v6  ;;  %v955_v8 = vand.u32 127, %v38_v7 }
  0x29   :  { %710 = vrot.lane.b32.xlu1 %v709_v3, %s887_s6  ;;  %s894_s11 = smov 111   ;;  %s897_s12 = smov [#allocation8]  }
  0x2a   :  { %700 = vrot.lane.b32.xlu0 %v699_v5, %s887_s6  ;;  %v958_v9 = vadd.s32 128, %v955_v8  ;;  %v45_v10 = vand.u32 15, %v955_v8  ;;  %vm65_vm0 = vcmp.ge.s32.totalorder %v955_v8, 16  ;;  %vm137_vm2 = vcmp.lt.s32.totalorder %v955_v8, 1  ;;  %s564_s13 = sshll.u32 %s897_s12, 4  ;;  %s565_s13 = int_to_ptr.vmem [resolvable:$true] %s564_s13 }
  0x2b   :  { %vm88_vm3 = vcmp.lt.s32.totalorder %v955_v8, 17  ;;  %vm120_vm4 = vcmp.lt.s32.totalorder %v955_v8, 15  ;;  %vm105_vm6 = vcmp.lt.s32.totalorder %v955_v8, 16  ;;  %s855_s14 = scalar_lea.vmem %s565_s13, 512  ;;  %p860_p3 = scmp.lt.s32.totalorder %s565_s13, %s565_s13 }
  0x2c   :  { %v52_v12 = vand.u32 15, %v958_v9  ;;  %vm963_vm1 = vcmp.gt.s32.totalorder %v45_v10, 0  ;;  %vm987_vm9 = vcmp.lt.s32.totalorder %v45_v10, 15  ;;  %p856_p2 = scmp.ne.s32.totalorder %s565_s13, %s855_s14  ;;  %p861_p4 = scmp.lt.s32.totalorder %s855_s14, %s855_s14 }
  0x2d   :  { %715 = vrot.lane.b32.xlu1 %v709_v3, %s885_s20  ;;  %vm979_vm7 = vmand %vm65_vm0, %vm963_vm1 }
  0x2e   :  { %705 = vrot.lane.b32.xlu0 %v699_v5, %s885_s20  ;;  %vm970_vm5 = vcmp.gt.s32.totalorder %v52_v12, 0  ;;  %vm983_vm8 = vcmp.lt.s32.totalorder %v52_v12, 15  ;;  %vm1018_vm12 = vmpackc.low %vm65_vm0, %vm979_vm7  ;;  %p862_p5 = por %p861_p4, %p860_p3 }
  0x2f   :  { %vm1000_vm11 = vmpackc.low %vm895_vm10, %vm970_vm5 }
  0x30   :  { %vm1028_vm13 = vmand %vm65_vm0, %vm987_vm9  ;;  %vm154_vm0 = vcmp.lt.s32.totalorder %v955_v8, 127  ;;  %p863_p6 = pnand %p862_p5, %p856_p2 }
  0x31   :  { %725 = vrot.lane.b32.xlu1 %v699_v5, %s888_s1  ;;  %vm631_vm14 = vmpackc.low %vm970_vm5, %vm983_vm8 }
  0x32   :  { %720 = vrot.lane.b32.xlu0 %v699_v5, %s889_s7  ;;  %vm634_vm15 = vmpackc.low %vm963_vm1, %vm1028_vm13  ;;  %vm201_vm13 = vcmp.lt.s32.totalorder %v955_v8, 111 }
  0x33   :  { %vm1106_vm7 = vmpackc.low %vm987_vm9, %vm895_vm10 }
  0x35   :  { %735 = vrot.lane.b32.xlu1 %v709_v3, %s888_s1 }
  0x36   :  { %730 = vrot.lane.b32.xlu0 %v709_v3, %s889_s7 }
  0x39   :  { %745 = vrot.lane.b32.xlu1 %v709_v3, %s890_s8 }
  0x3a   :  { %740 = vrot.lane.b32.xlu0 %v699_v5, %s890_s8 }
  0x3d   :  { %755 = vrot.lane.b32.xlu1 %v699_v5, %s891_s9 }
  0x3e   :  { %750 = vrot.lane.b32.xlu0 %v699_v5, %s892_s10 }
  0x41   :  { %765 = vrot.lane.b32.xlu1 %v709_v3, %s891_s9 }
  0x42   :  { %760 = vrot.lane.b32.xlu0 %v709_v3, %s892_s10 }
  0x45   :  { %775 = vrot.lane.b32.xlu1 %v709_v3, %s894_s11 }
  0x46   :  { %770 = vrot.lane.b32.xlu0 %v699_v5, %s894_s11 }
  0x9b   :  { %v711_v11 = vpop.permute.xlu1 %710 }
  0x9c   :  { %v701_v13 = vpop.permute.xlu0 %700  ;;  %v713_v14 = vunpack.i.h.bf16 %v711_v11  ;;  %v712_v15 = vunpack.i.l.bf16 %v711_v11 }
  0x9d   :  { %v703_v17 = vunpack.i.h.bf16 %v701_v13  ;;  %v702_v18 = vunpack.i.l.bf16 %v701_v13 }
  0x9e   :  { %v221_v29 = vsel %vm88_vm3, %v712_v15, %v713_v14  ;;  %v222_v30 = vsel %vm88_vm3, %v713_v14, %v712_v15 }
  0x9f   :  { %v716_v19 = vpop.permute.xlu1 %715  ;;  %v89_v31 = vsel %vm88_vm3, %v702_v18, %v703_v17  ;;  %v90_v34 = vsel %vm88_vm3, %v703_v17, %v702_v18  ;;  %vm186_vm3 = vcmp.lt.s32.totalorder %v955_v8, 112 }
  0xa0   :  { %v718_v21 = vunpack.i.h.bf16 %v716_v19  ;;  %v717_v22 = vunpack.i.l.bf16 %v716_v19  ;;  %v706_v23 = vpop.permute.xlu0 %705 }
  0xa1   :  { %v708_v27 = vunpack.i.h.bf16 %v706_v23  ;;  %v707_v28 = vunpack.i.l.bf16 %v706_v23 }
  0xa2   :  { %v231_v33 = vsel %vm105_vm6, %v717_v22, %v718_v21  ;;  %v232_v35 = vsel %vm105_vm6, %v718_v21, %v717_v22 }
  0xa3   :  { %v726_v36 = vpop.permute.xlu1 %725  ;;  %v106_v37 = vsel %vm105_vm6, %v707_v28, %v708_v27  ;;  %v654_v38 = vpack.c.bf16 %v231_v33, %v221_v29  ;;  %v107_v39 = vsel %vm105_vm6, %v708_v27, %v707_v28  ;;  %v657_v41 = vpack.c.bf16 %v232_v35, %v222_v30  ;;  %vm1088_vm6 = vmpackc.low %vm983_vm8, %vm895_vm10 }
  0xa4   :  { %v728_v42 = vunpack.i.h.bf16 %v726_v36  ;;  %v727_v43 = vunpack.i.l.bf16 %v726_v36  ;;  %v721_v44 = vpop.permute.xlu0 %720  ;;  %v624_v45 = vpack.c.bf16 %v106_v37, %v89_v31  ;;  %v627_v46 = vpack.c.bf16 %v107_v39, %v90_v34 }
  0xa5   :  { %v723_v47 = vunpack.i.h.bf16 %v721_v44  ;;  %v722_v48 = vunpack.i.l.bf16 %v721_v44  ;;  %656 = vmatprep.subr.msk.bf16.mxu1 %vm1000_vm11, %v654_v38 }
  0xa6   :  { %v138_v50 = vsel %vm137_vm2, %v727_v43, %v728_v42  ;;  %v139_v51 = vsel %vm137_vm2, %v728_v42, %v727_v43  ;;  %626 = vmatprep.subr.msk.bf16.mxu0 %vm1000_vm11, %v624_v45  ;;  %659 = vmatpush1.bf16.msk.msra.mxu1 %vm1018_vm12, %v657_v41  ;;  %v74_v42 = vshrl.u32 %v38_v7, 7 }
  0xa7   :  { %v121_v52 = vsel %vm120_vm4, %v722_v48, %v723_v47  ;;  %v122_v53 = vsel %vm120_vm4, %v723_v47, %v722_v48  ;;  %629 = vmatpush1.bf16.msk.msra.mxu0 %vm1018_vm12, %v627_v46  ;;  %v736_v54 = vpop.permute.xlu1 %735  ;;  %vm1142_vm12 = vmpackc.low %vm895_vm10, %vm963_vm1 }
  0xa8   :  { %v630_v55 = vpack.c.bf16 %v138_v50, %v121_v52  ;;  %v633_v56 = vpack.c.bf16 %v139_v51, %v122_v53  ;;  %v738_v57 = vunpack.i.h.bf16 %v736_v54  ;;  %v737_v58 = vunpack.i.l.bf16 %v736_v54  ;;  %v731_v59 = vpop.permute.xlu0 %730 }
  0xa9   :  { %v733_v60 = vunpack.i.h.bf16 %v731_v59  ;;  %v732_v61 = vunpack.i.l.bf16 %v731_v59  ;;  %vm75_vm1 = vcmp.eq.s32.totalorder %v74_v42, 0 }
  0xaa   :  { %v251_v62 = vsel %vm137_vm2, %v737_v58, %v738_v57  ;;  %v252_v63 = vsel %vm137_vm2, %v738_v57, %v737_v58  ;;  %632 = vmatprep.subr.msk.bf16.mxu0 %vm631_vm14, %v630_v55  ;;  %vm68_vm2 = vcmp.lt.s32.totalorder %v958_v9, 240  ;;  %v896_v9 = vmov 1.0  }
  0xab   :  { %v241_v3 = vsel %vm120_vm4, %v732_v61, %v733_v60  ;;  %v242_v5 = vsel %vm120_vm4, %v733_v60, %v732_v61  ;;  %635 = vmatpush1.bf16.msk.msra.mxu0 %vm634_vm15, %v633_v56  ;;  %v746_v6 = vpop.permute.xlu1 %745  ;;  %vm169_vm4 = vcmp.lt.s32.totalorder %v955_v8, 113  ;;  %vm173_vm11 = vmand %vm68_vm2, %vm970_vm5 }
  0xac   :  { %v660_v10 = vpack.c.bf16 %v251_v62, %v241_v3  ;;  %v663_v11 = vpack.c.bf16 %v252_v63, %v242_v5  ;;  %v748_v12 = vunpack.i.h.bf16 %v746_v6  ;;  %v747_v13 = vunpack.i.l.bf16 %v746_v6  ;;  %v741_v14 = vpop.permute.xlu0 %740  ;;  %vm1134_vm5 = vmpackc.low %vm68_vm2, %vm173_vm11 }
  0xad   :  { %v743_v15 = vunpack.i.h.bf16 %v741_v14  ;;  %v742_v17 = vunpack.i.l.bf16 %v741_v14  ;;  %vm205_vm10 = vmand %vm68_vm2, %vm983_vm8 }
  0xae   :  { %v263_v18 = vsel %vm154_vm0, %v747_v13, %v748_v12  ;;  %v264_v19 = vsel %vm154_vm0, %v748_v12, %v747_v13  ;;  %662 = vmatprep.subr.msk.bf16.mxu1 %vm631_vm14, %v660_v10  ;;  %vm649_vm14 = vmpackc.low %vm75_vm1, %vm205_vm10 }
  0xaf   :  { %v666_v22 = vpack.c.bf16 %v264_v19, %v942_v1  ;;  %v669_v23 = vpack.c.bf16 %v263_v18, %v940_v0  ;;  %v155_v24 = vsel %vm154_vm0, %v742_v17, %v743_v15  ;;  %v156_v27 = vsel %vm154_vm0, %v743_v15, %v742_v17  ;;  %665 = vmatpush1.bf16.msk.msra.mxu1 %vm634_vm15, %v663_v11  ;;  %v756_v28 = vpop.permute.xlu1 %755  ;;  %vm652_vm8 = vmpackc.low %vm75_vm1, %vm987_vm9  ;;  %v299_v11 = vld [vmem:[#allocation6] sm:$0xff] }
  0xb0   :  { %v636_v30 = vpack.c.bf16 %v156_v27, %v948_v4  ;;  %v639_v31 = vpack.c.bf16 %v155_v24, %v944_v2  ;;  %v758_v32 = vunpack.i.h.bf16 %v756_v28  ;;  %v757_v33 = vunpack.i.l.bf16 %v756_v28  ;;  %v751_v34 = vpop.permute.xlu0 %750 }
  0xb1   :  { %v753_v35 = vunpack.i.h.bf16 %v751_v34  ;;  %v752_v36 = vunpack.i.l.bf16 %v751_v34  ;;  %668 = vmatprep.subr.msk.bf16.mxu1 %vm1088_vm6, %v666_v22  ;;  %vm340_vm15 = vcmask 654336  }
  0xb2   :  { %v187_v37 = vsel %vm186_vm3, %v757_v33, %v758_v32  ;;  %v188_v38 = vsel %vm186_vm3, %v758_v32, %v757_v33  ;;  %638 = vmatprep.subr.msk.bf16.mxu0 %vm1088_vm6, %v636_v30 }
  0xb3   :  { %v170_v20 = vsel %vm169_vm4, %v752_v36, %v753_v35  ;;  %v171_v39 = vsel %vm169_vm4, %v753_v35, %v752_v36  ;;  %641 = vmatpush1.bf16.msk.msra.mxu0 %vm1106_vm7, %v639_v31  ;;  %671 = vmatpush1.bf16.msk.msra.mxu1 %vm1106_vm7, %v669_v23  ;;  %v766_v40 = vpop.permute.xlu1 %765 }
  0xb4   :  { %v642_v43 = vpack.c.bf16 %v188_v38, %v171_v39  ;;  %v645_v44 = vpack.c.bf16 %v187_v37, %v170_v20  ;;  %v768_v45 = vunpack.i.h.bf16 %v766_v40  ;;  %v767_v46 = vunpack.i.l.bf16 %v766_v40  ;;  %v761_v47 = vpop.permute.xlu0 %760 }
  0xb5   :  { %v763_v49 = vunpack.i.h.bf16 %v761_v47  ;;  %v762_v50 = vunpack.i.l.bf16 %v761_v47 }
  0xb6   :  { %v283_v51 = vsel %vm186_vm3, %v767_v46, %v768_v45  ;;  %v284_v7 = vsel %vm186_vm3, %v768_v45, %v767_v46  ;;  %644 = vmatprep.subr.msk.bf16.mxu0 %vm1134_vm5, %v642_v43 }
  0xb7   :  { %v273_v16 = vsel %vm169_vm4, %v762_v50, %v763_v49  ;;  %v274_v52 = vsel %vm169_vm4, %v763_v49, %v762_v50  ;;  %647 = vmatpush1.bf16.msk.msra.mxu0 %vm1142_vm12, %v645_v44  ;;  %v776_v53 = vpop.permute.xlu1 %775 }
  0xb8   :  { %v672_v54 = vpack.c.bf16 %v284_v7, %v274_v52  ;;  %v675_v55 = vpack.c.bf16 %v283_v51, %v273_v16  ;;  %v778_v56 = vunpack.i.h.bf16 %v776_v53  ;;  %v777_v57 = vunpack.i.l.bf16 %v776_v53  ;;  %v771_v58 = vpop.permute.xlu0 %770 }
  0xb9   :  { %v773_v59 = vunpack.i.h.bf16 %v771_v58  ;;  %v772_v60 = vunpack.i.l.bf16 %v771_v58 }
  0xba   :  { %v293_v61 = vsel %vm201_vm13, %v777_v57, %v778_v56  ;;  %v294_v62 = vsel %vm201_vm13, %v778_v56, %v777_v57  ;;  %674 = vmatprep.subr.msk.bf16.mxu1 %vm1134_vm5, %v672_v54 }
  0xbb   :  { %v678_v25 = vpack.c.bf16 %v896_v9, %v294_v62  ;;  %v681_v63 = vpack.c.bf16 %v896_v9, %v293_v61  ;;  %v202_v3 = vsel %vm201_vm13, %v772_v60, %v773_v59  ;;  %v203_v5 = vsel %vm201_vm13, %v773_v59, %v772_v60  ;;  %677 = vmatpush1.bf16.msk.msra.mxu1 %vm1142_vm12, %v675_v55 }
  0xbc   :  { %v648_v6 = vpack.c.bf16 %v896_v9, %v203_v5  ;;  %v651_v10 = vpack.c.bf16 %v896_v9, %v202_v3 }
  0xbd   :  { %680 = vmatprep.subr.msk.bf16.mxu1 %vm649_vm14, %v678_v25 }
  0xbe   :  { %650 = vmatprep.subr.msk.bf16.mxu0 %vm649_vm14, %v648_v6 }
  0xbf   :  { %653 = vmatpush1.bf16.msk.msra.mxu0 %vm652_vm8, %v651_v10  ;;  %683 = vmatpush1.bf16.msk.msra.mxu1 %vm652_vm8, %v681_v63 }
  0xc2   :  { %578 = vmatmul.mubr.msk.f32.vlgmr.msra.gmra.mrb[0].mxu0 %vm340_vm15, %v299_v11  ;;  %579 = vmatmul.mubr.msk.f32.vlgmr.msra.gmra.mrb[0].mxu1 %vm340_vm15, %v299_v11 }
 0x195   :  { %v410_v12 = vpop.f32.mrb[0].mxu0  ;;  %v481_v8 = vpop.f32.mrb[0].mxu1 }
 0x196   :  { %v580_v13 = vmul.f32 -1.442695, %v410_v12  ;;  %v586_v14 = vmul.f32 -1.442695, %v481_v8  ;;  %v412_v15 = vpop.f32.mrb[1].mxu0  ;;  %v483_v17 = vpop.f32.mrb[1].mxu1 }
 0x197   :  { %v581_v18 = vmul.f32 -1.442695, %v412_v15  ;;  %v587_v19 = vmul.f32 -1.442695, %v483_v17 }
 0x198   :  { %779 = vpow2.f32 %v580_v13 }
 0x199   :  { %781 = vpow2.f32 %v586_v14 }
 0x19a   :  { %783 = vpow2.f32 %v581_v18 }
 0x19b   :  { %785 = vpow2.f32 %v587_v19 }
 0x1a2   :  { %v780_v26 = vpop.eup %779 }
 0x1a3   :  { %v782_v21 = vpop.eup %781  ;;  %v494_v22 = vadd.f32 1.0, %v780_v26 }
 0x1a4   :  { %v784_v23 = vpop.eup %783  ;;  %v530_v24 = vadd.f32 1.0, %v782_v21 }
 0x1a5   :  { %v786_v27 = vpop.eup %785  ;;  %787 = vrcp.f32 %v494_v22  ;;  %v495_v28 = vadd.f32 1.0, %v784_v23 }
 0x1a6   :  { %789 = vrcp.f32 %v530_v24  ;;  %v531_v29 = vadd.f32 1.0, %v786_v27 }
 0x1a7   :  { %791 = vrcp.f32 %v495_v28 }
 0x1a8   :  { %793 = vrcp.f32 %v531_v29 }
 0x1af   :  { %v788_v30 = vpop.eup %787 }
 0x1b0   :  { %v790_v31 = vpop.eup %789  ;;  %v500_v32 = vmul.f32 %v788_v30, %v410_v12 }
 0x1b1   :  { %v792_v33 = vpop.eup %791  ;;  %v536_v34 = vmul.f32 %v790_v31, %v481_v8 }
 0x1b2   :  { %v794_v35 = vpop.eup %793  ;;  %v582_v36 = vmul.f32 -1.442695, %v500_v32  ;;  %v501_v37 = vmul.f32 %v792_v33, %v412_v15  ;;  %v516_v7 = vadd.f32 %v500_v32, %v944_v2 }
 0x1b3   :  { %v588_v38 = vmul.f32 -1.442695, %v536_v34  ;;  %v537_v20 = vmul.f32 %v794_v35, %v483_v17  ;;  %v552_v53 = vadd.f32 %v536_v34, %v940_v0 }
 0x1b4   :  { %795 = vpow2.f32 %v582_v36  ;;  %v583_v39 = vmul.f32 -1.442695, %v501_v37  ;;  %v517_v57 = vadd.f32 %v501_v37, %v948_v4 }
 0x1b5   :  { %797 = vpow2.f32 %v588_v38  ;;  %v589_v40 = vmul.f32 -1.442695, %v537_v20  ;;  %v553_v60 = vadd.f32 %v537_v20, %v942_v1 }
 0x1b6   :  { %799 = vpow2.f32 %v583_v39 }
 0x1b7   :  { %801 = vpow2.f32 %v589_v40 }
 0x1be   :  { %v796_v41 = vpop.eup %795 }
 0x1bf   :  { %v798_v42 = vpop.eup %797  ;;  %v508_v43 = vadd.f32 1.0, %v796_v41 }
 0x1c0   :  { %v800_v44 = vpop.eup %799  ;;  %v544_v45 = vadd.f32 1.0, %v798_v42 }
 0x1c1   :  { %v802_v46 = vpop.eup %801  ;;  %803 = vrcp.f32 %v508_v43  ;;  %v509_v47 = vadd.f32 1.0, %v800_v44 }
 0x1c2   :  { %805 = vrcp.f32 %v544_v45  ;;  %v545_v48 = vadd.f32 1.0, %v802_v46 }
 0x1c3   :  { %807 = vrcp.f32 %v509_v47 }
 0x1c4   :  { %809 = vrcp.f32 %v545_v48 }
 0x1cb   :  { %v804_v49 = vpop.eup %803 }
 0x1cc   :  { %v806_v50 = vpop.eup %805  ;;  %v584_v51 = vadd.f32 -0.5, %v804_v49 }
 0x1cd   :  { %v808_v16 = vpop.eup %807  ;;  %v590_v52 = vadd.f32 -0.5, %v806_v50 }
 0x1ce   :  { %v810_v54 = vpop.eup %809  ;;  %v518_v55 = vmul.f32 %v584_v51, %v516_v7  ;;  %v585_v56 = vadd.f32 -0.5, %v808_v16 }
 0x1cf   :  { %v554_v58 = vmul.f32 %v590_v52, %v552_v53  ;;  %v591_v59 = vadd.f32 -0.5, %v810_v54 }
 0x1d0   :  { %520 = vst [vmem:[#allocation8] sm:$0xff] %v518_v55  ;;  %v519_v61 = vmul.f32 %v585_v56, %v517_v57 }
 0x1d1   :  { %557 = vst [vmem:[#allocation8 + $0x10] sm:$0xff] %v554_v58  ;;  %v555_v62 = vmul.f32 %v591_v59, %v553_v60 }
 0x1d2   :  { %521 = vst [vmem:[#allocation8 + $0x8] sm:$0xff] %v519_v61 }
 0x1d3   :  { %558 = vst [vmem:[#allocation8 + $0x18] sm:$0xff] %v555_v62 }
 0x1d4   :  { %866 = shalt.err (!%p863_p6)
}
 0x1d5   :  { %s867_s17 = scalar_lea.hbm %s1200_s2, 512 }
 0x1d6   :  { %p868_p7 = scmp.ne.s32.totalorder %s1200_s2, %s867_s17  ;;  %p871_p8 = scmp.lt.u32.totalorder %s867_s17, %s1200_s2 }
 0x1d8   :  { %p873_p9 = pnand %p871_p8, %p868_p7 }
 0x1da   :  { %876 = shalt.err (!%p873_p9)
}
 0x1db   :  { %570 = dma.vmem_to_hbm [thread:$0]  %s565_s13, 512, %s1200_s2, [#allocation5], %s884_s19, %s884_s19, %s885_s20  }
 0x1dc   :  { %881 = dma.done.wait [#allocation5], 512  }
 0x1dd   :  { %882 = vsyncadd [#allocation5], 4294966784 }
 0x1de   :  { %574 = vsyncpa [#allocation4], 1 }
 0x1df   :  { %575 = vsyncpa [#allocation7], 1 }
 0x1e0   :  { %576 = vsyncpa [#allocation5], 1 }

</bundles_post_ra>
